<compile_context>
chip_gen: v5e
topology: v5e:2x2
jax: 0.10.0
libtpu: 0.0.40
codegen_flags: <defaults>
</compile_context>

<pallas_src>
import math

import jax
import jax.numpy as jnp
from jax import lax
from jax.experimental import pallas as pl
from jax.experimental.pallas import tpu as pltpu


def _round_up(v, m):
    return ((v + m - 1) // m) * m


def _pick_tile_n(hw_pad, n_trans):
    """Lane-dense output tile: multiple of 128 dividing hw_pad, as large as
    possible (<=2048) while still giving >=4 grid cells for megacore sharding."""
    divisors = [t for t in range(128, min(hw_pad, 2048) + 1, 128) if hw_pad % t == 0]
    for t in sorted(divisors, reverse=True):
        if n_trans * (hw_pad // t) >= 4:
            return t
    return max(divisors)


def _pick_tile_k(hw_pad):
    for t in (512, 384, 256, 128):
        if hw_pad % t == 0:
            return t
    return 128  # hw_pad is always a multiple of 128


def _sample_theta(n_trans, degrees, key):
    """Angle sampling, mirroring the torch module (host-side glue)."""
    if key is None:
        key = jax.random.PRNGKey(0)
    if degrees == 360:
        angles = jnp.arange(1, 360, dtype=jnp.float32)
    else:
        # TODO(synk): deepinv's degrees!=360 branch uses int(360/(degrees+1))
        # truncation and randperm(group_size); kept approximately.
        step = max(int(360 / (degrees + 1)), 1)
        angles = jnp.arange(0, 360, step, dtype=jnp.float32)[1:]
    # TODO(synk): torch.randperm RNG stream cannot be reproduced bit-exactly;
    # jax.random.permutation gives the same distribution.
    return jax.random.permutation(key, angles)[:n_trans]  # float32 end-to-end


def _source_index_map(theta, H, W):
    """Flat nearest-neighbour source index per (transform, output pixel); -1 => zero pad."""
    HW = H * W
    rad = theta.astype(jnp.float32) * jnp.float32(math.pi / 180.0)
    c = jnp.cos(rad)[:, None]
    s = jnp.sin(rad)[:, None]
    cy = (H - 1) / 2.0
    cx = (W - 1) / 2.0
    ii, jj = jnp.meshgrid(jnp.arange(H, dtype=jnp.float32),
                          jnp.arange(W, dtype=jnp.float32), indexing="ij")
    yr = ii.reshape(1, HW) - cy
    xr = jj.reshape(1, HW) - cx
    # Inverse affine map (CCW rotation, torchvision convention).
    x_src = c * xr - s * yr + cx
    y_src = s * xr + c * yr + cy
    # TODO(synk): jnp.round is round-half-to-even; verify against torchvision
    # NEAREST behaviour at exact .5 source coordinates.
    r = jnp.round(y_src).astype(jnp.int32)
    q = jnp.round(x_src).astype(jnp.int32)
    valid = (r >= 0) & (r < H) & (q >= 0) & (q < W)
    return jnp.where(valid, jnp.clip(r, 0, H - 1) * W + jnp.clip(q, 0, W - 1), -1)


def rotate_pallas(x, n_trans, degrees=360, key=None):
    """Pallas equivalent of deepinv Rotate(n_trans, degrees).forward(x)."""
    B, C, H, W = x.shape
    BC, HW = B * C, H * W
    HW_pad = _round_up(HW, 128)
    TILE_N = _pick_tile_n(HW_pad, n_trans)
    num_n = HW_pad // TILE_N
    TILE_K = _pick_tile_k(HW_pad)
    num_k = HW_pad // TILE_K

    theta = _sample_theta(n_trans, degrees, key)         # float32 (never cast to x.dtype)
    src = _source_index_map(theta, H, W)                 # (n_trans, HW) int32
    src_pad = jnp.pad(src, ((0, 0), (0, HW_pad - HW)), constant_values=-1)

    # Per-(transform, output-tile) source band -> K-chunk bounds, prefetched to
    # SMEM so the kernel only visits chunks that can contribute.
    st = src_pad.reshape(n_trans, num_n, TILE_N)
    has = jnp.any(st >= 0, axis=-1)
    smin = jnp.min(jnp.where(st >= 0, st, HW_pad), axis=-1)
    smax = jnp.max(st, axis=-1)
    kb_min = jnp.where(has, smin // TILE_K, 0).astype(jnp.int32).reshape(-1)
    kb_max = jnp.where(has, smax // TILE_K, -1).astype(jnp.int32).reshape(-1)  # inclusive

    # Resident source block, chunk-major so the K loop indexes the leading axis
    # (no dynamic lane slicing inside the kernel).
    x_flat = jnp.pad(x.reshape(BC, HW), ((0, 0), (0, HW_pad - HW)))
    x_k = x_flat.reshape(BC, num_k, TILE_K).transpose(1, 0, 2)   # (num_k, BC, TILE_K)
    src3 = src_pad.reshape(n_trans, 1, HW_pad)

    # bf16 inputs contract in bf16 (MXU-native, exact for 0/1 one-hot weights);
    # everything else contracts in f32 at HIGHEST precision (exact gather).
    mm_dtype = jnp.bfloat16 if x.dtype == jnp.bfloat16 else jnp.float32
    precision = None if mm_dtype == jnp.bfloat16 else lax.Precision.HIGHEST

    def kernel(kmin_ref, kmax_ref, x_ref, src_ref, o_ref, acc_ref):
        t = pl.program_id(0)
        n = pl.program_id(1)
        lin = t * num_n + n
        kb_lo = kmin_ref[lin]
        kb_hi = kmax_ref[lin]            # inclusive; -1 => fully zero tile
        src_t = src_ref[...]             # (1, TILE_N) int32, -1 = zero pad

        acc_ref[...] = jnp.zeros_like(acc_ref)

        def body(kb, carry):
            # On-chip one-hot slab for this K chunk only: (TILE_K, TILE_N).
            k_ids = kb * TILE_K + lax.broadcasted_iota(jnp.int32, (TILE_K, 1), 0)
            onehot = (k_ids == src_t).astype(mm_dtype)
            acc_ref[...] += jnp.dot(
                x_ref[kb].astype(mm_dtype), onehot,
                precision=precision, preferred_element_type=jnp.float32,
            )
            return carry

        lax.fori_loop(kb_lo, kb_hi + 1, body, 0)
        o_ref[...] = acc_ref[...].astype(o_ref.dtype)

    itemsize = x.dtype.itemsize
    mm_itemsize = jnp.dtype(mm_dtype).itemsize
    vmem_bytes = (
        2 * num_k * BC * TILE_K * itemsize          # resident x (double-buffered worst case)
        + 2 * TILE_N * 4                            # src tile
        + 2 * BC * TILE_N * itemsize                # output tile (double-buffered)
        + BC * TILE_N * 4                           # f32 accumulator scratch
        + 4 * TILE_K * TILE_N * max(mm_itemsize, 4) # one-hot / compare temporaries
    )
    vmem_limit = int(min(max(vmem_bytes + (4 << 20), 32 << 20), 64 << 20))

    out = pl.pallas_call(
        kernel,
        out_shape=jax.ShapeDtypeStruct((n_trans, BC, HW_pad), x.dtype),
        grid_spec=pltpu.PrefetchScalarGridSpec(
            num_scalar_prefetch=2,
            grid=(n_trans, num_n),
            in_specs=[
                # x stays resident across the whole grid (constant block index).
                # TODO(synk): single-buffer this grid-invariant block
                # (pipeline_mode=pl.Buffered(1)) once confirmed on the target
                # jax version; default double-buffering only costs VMEM here.
                pl.BlockSpec((num_k, BC, TILE_K), lambda t, n, lo, hi: (0, 0, 0)),
                pl.BlockSpec((pl.Squeezed(), 1, TILE_N), lambda t, n, lo, hi: (t, 0, n)),
            ],
            out_specs=pl.BlockSpec(
                (pl.Squeezed(), BC, TILE_N), lambda t, n, lo, hi: (t, 0, n)
            ),
            scratch_shapes=[pltpu.VMEM((BC, TILE_N), jnp.float32)],
        ),
        compiler_params=pltpu.CompilerParams(
            dimension_semantics=("parallel", "parallel"),
            vmem_limit_bytes=vmem_limit,
        ),
    )(kb_min, kb_max, x_k, src3)

    out = out[:, :, :HW]
    # torch.cat([rotate(data, th) for th in theta], dim=0)
    return out.reshape(n_trans * B, C, H, W)


def _rotate_reference(x, n_trans, degrees=360, key=None):
    """Pure-JAX reference (same sampling + nearest gather) for validation."""
    B, C, H, W = x.shape
    theta = _sample_theta(n_trans, degrees, key)
    src = _source_index_map(theta, H, W)                      # (n_trans, HW)
    xf = x.reshape(B * C, H * W)
    g = jnp.take(xf, jnp.clip(src, 0, H * W - 1), axis=1)     # (BC, n_trans, HW)
    g = jnp.where(src[None, :, :] >= 0, g, 0).astype(x.dtype)
    g = jnp.transpose(g, (1, 0, 2))                           # (n_trans, BC, HW)
    return g.reshape(n_trans * B, C, H, W)


if __name__ == "__main__":
    key = jax.random.PRNGKey(0)
    k_data, k_theta = jax.random.split(key)
    B, C, H, W = 2, 4, 16, 16
    n_trans = 3
    x = jax.random.normal(k_data, (B, C, H, W), dtype=jnp.float32)

    y = rotate_pallas(x, n_trans=n_trans, degrees=360, key=k_theta)
    y = jax.block_until_ready(y)

    assert y.shape == (n_trans * B, C, H, W), y.shape
    assert y.dtype == x.dtype

    y_ref = _rotate_reference(x, n_trans=n_trans, degrees=360, key=k_theta)
    assert jnp.allclose(y, y_ref, atol=1e-3, rtol=1e-3), \
        float(jnp.max(jnp.abs(y - y_ref)))

    print("KERNEL_OK")
</pallas_src>

<mosaic_0001>
module attributes {stable_mosaic.version = 11 : i64} {
  func.func @kernel(%arg0: i32, %arg1: i32, %arg2: memref<6xi32, #tpu.memory_space<smem>>, %arg3: memref<6xi32, #tpu.memory_space<smem>>, %arg4: memref<1x8x256xf32, #tpu.memory_space<vmem>>, %arg5: memref<1x1x128xi32, #tpu.memory_space<vmem>>, %arg6: memref<1x8x128xf32, #tpu.memory_space<vmem>>, %arg7: memref<8x128xf32, #tpu.memory_space<vmem>>) attributes {dimension_semantics = [#tpu.dimension_semantics<parallel>, #tpu.dimension_semantics<parallel>], iteration_bounds = array<i64: 3, 2>, scalar_prefetch = 2 : i64, scratch_operands = 1 : i64, tpu.core_type = #tpu.core_type<tc>, window_params = [{pipeline_mode = #tpu.pipeline_mode<synchronous>, transform_indices = @transform_0, window_bounds = array<i64: 1, 8, 256>}, {transform_indices = @transform_1, window_bounds = array<i64: 1, 1, 128>}, {transform_indices = @transform_2, window_bounds = array<i64: 1, 8, 128>}]} {
    %c2_i32 = arith.constant 2 : i32
    %0 = arith.muli %arg0, %c2_i32 : i32
    %1 = arith.addi %0, %arg1 : i32
    %2 = arith.index_cast %1 : i32 to index
    %3 = memref.load %arg2[%2] : memref<6xi32, #tpu.memory_space<smem>>
    %4 = arith.index_cast %1 : i32 to index
    %5 = memref.load %arg3[%4] : memref<6xi32, #tpu.memory_space<smem>>
    %c0 = arith.constant 0 : index
    %c0_0 = arith.constant 0 : index
    %c0_1 = arith.constant 0 : index
    %6 = vector.load %arg5[%c0, %c0_0, %c0_1] : memref<1x1x128xi32, #tpu.memory_space<vmem>>, vector<1x1x128xi32>
    %7 = vector.shape_cast %6 : vector<1x1x128xi32> to vector<1x128xi32>
    %cst = arith.constant 0.000000e+00 : f32
    %8 = vector.broadcast %cst : f32 to vector<8x128xf32>
    %c0_2 = arith.constant 0 : index
    %c0_3 = arith.constant 0 : index
    %9 = vector.load %arg7[%c0_2, %c0_3] : memref<8x128xf32, #tpu.memory_space<vmem>>, vector<8x128xf32>
    tpu.vector_store %arg7[%c0_2, %c0_3], %8 {strides = array<i32>} : memref<8x128xf32, #tpu.memory_space<vmem>>, vector<8x128xf32>,
    %c1_i32 = arith.constant 1 : i32
    %10 = arith.addi %5, %c1_i32 : i32
    %c0_i32 = arith.constant 0 : i32
    %11 = arith.subi %10, %3 : i32
    %12 = arith.addi %3, %11 : i32
    %c1_i32_4 = arith.constant 1 : i32
    scf.for %arg8 = %3 to %12 step %c1_i32_4  : i32 {
      %c256_i32 = arith.constant 256 : i32
      %17 = arith.muli %arg8, %c256_i32 : i32
      %18 = tpu.iota {dimensions = array<i32: 0>} : vector<256x1xi32>
      %19 = vector.broadcast %17 : i32 to vector<256x1xi32>
      %20 = arith.addi %19, %18 : vector<256x1xi32>
      %21 = vector.broadcast %20 : vector<256x1xi32> to vector<256x128xi32>
      %22 = vector.broadcast %7 : vector<1x128xi32> to vector<256x128xi32>
      %23 = arith.cmpi eq, %21, %22 : vector<256x128xi32>
      %24 = arith.extui %23 : vector<256x128xi1> to vector<256x128xi32>
      %25 = arith.sitofp %24 : vector<256x128xi32> to vector<256x128xf32>
      %c0_10 = arith.constant 0 : index
      %c0_11 = arith.constant 0 : index
      %26 = vector.load %arg7[%c0_10, %c0_11] : memref<8x128xf32, #tpu.memory_space<vmem>>, vector<8x128xf32>
      %27 = arith.index_cast %arg8 : i32 to index
      %c0_12 = arith.constant 0 : index
      %c0_13 = arith.constant 0 : index
      %28 = vector.load %arg4[%27, %c0_12, %c0_13] : memref<1x8x256xf32, #tpu.memory_space<vmem>>, vector<1x8x256xf32>
      %29 = vector.shape_cast %28 : vector<1x8x256xf32> to vector<8x256xf32>
      %cst_14 = arith.constant dense<0.000000e+00> : vector<8x128xf32>
      %30 = tpu.matmul %29, %25, %cst_14 {dimension_numbers = #tpu.dot_dimension_numbers<[1], [0], [0], [1], [0, 0, 1, 1], [], []>, precision = #tpu.contract_precision<fp32>} : vector<8x256xf32>, vector<256x128xf32>, vector<8x128xf32> -> vector<8x128xf32>
      %31 = arith.addf %26, %30 : vector<8x128xf32>
      %c0_15 = arith.constant 0 : index
      %c0_16 = arith.constant 0 : index
      %32 = vector.load %arg7[%c0_15, %c0_16] : memref<8x128xf32, #tpu.memory_space<vmem>>, vector<8x128xf32>
      tpu.vector_store %arg7[%c0_15, %c0_16], %31 {strides = array<i32>} : memref<8x128xf32, #tpu.memory_space<vmem>>, vector<8x128xf32>,
    }
    %c0_5 = arith.constant 0 : index
    %c0_6 = arith.constant 0 : index
    %13 = vector.load %arg7[%c0_5, %c0_6] : memref<8x128xf32, #tpu.memory_space<vmem>>, vector<8x128xf32>
    %c0_7 = arith.constant 0 : index
    %c0_8 = arith.constant 0 : index
    %c0_9 = arith.constant 0 : index
    %14 = vector.load %arg6[%c0_7, %c0_8, %c0_9] : memref<1x8x128xf32, #tpu.memory_space<vmem>>, vector<1x8x128xf32>
    %15 = vector.shape_cast %14 : vector<1x8x128xf32> to vector<8x128xf32>
    %16 = vector.shape_cast %13 : vector<8x128xf32> to vector<1x8x128xf32>
    tpu.vector_store %arg6[%c0_7, %c0_8, %c0_9], %16 {strides = array<i32>} : memref<1x8x128xf32, #tpu.memory_space<vmem>>, vector<1x8x128xf32>,
    return
  }
  func.func @transform_0(%arg0: i32, %arg1: i32, %arg2: memref<6xi32, #tpu.memory_space<smem>>, %arg3: memref<6xi32, #tpu.memory_space<smem>>) -> (i32, i32, i32) {
    %c0_i32 = arith.constant 0 : i32
    %c0_i32_0 = arith.constant 0 : i32
    %c0_i32_1 = arith.constant 0 : i32
    %c0_i32_2 = arith.constant 0 : i32
    return %c0_i32, %c0_i32_0, %c0_i32_1 : i32, i32, i32
  }
  func.func @transform_1(%arg0: i32, %arg1: i32, %arg2: memref<6xi32, #tpu.memory_space<smem>>, %arg3: memref<6xi32, #tpu.memory_space<smem>>) -> (i32, i32, i32) {
    %c0_i32 = arith.constant 0 : i32
    %c0_i32_0 = arith.constant 0 : i32
    return %arg0, %c0_i32, %arg1 : i32, i32, i32
  }
  func.func @transform_2(%arg0: i32, %arg1: i32, %arg2: memref<6xi32, #tpu.memory_space<smem>>, %arg3: memref<6xi32, #tpu.memory_space<smem>>) -> (i32, i32, i32) {
    %c0_i32 = arith.constant 0 : i32
    %c0_i32_0 = arith.constant 0 : i32
    return %arg0, %c0_i32, %arg1 : i32, i32, i32
  }
}

</mosaic_0001>

<bundles_post_ra>
// kernel: tpu_custom_call.1
= control target key start
LH: loop header
LB: loop body
LE: loop exit
PB: predicated region body
PF: predicated region fallthrough
CT: control target
= control target key end

     0   :  { %s1639_s21 = smov [#allocation4]   ;;  %s1640_s22 = smov [#allocation5]   ;;  %s2913_s0 = inlined_call_operand.hbm [shape: s32[6], index: 0, kind: input, shape index: {}]   ;;  %s2914_s2 = inlined_call_operand.hbm [shape: f32[1,8,256], index: 2, kind: input, shape index: {}]   ;;  %s2915_s3 = inlined_call_operand.hbm [shape: s32[3,1,256], index: 3, kind: input, shape index: {}]   ;;  %s2916_s4 = inlined_call_operand.hbm [shape: f32[3,8,256], index: 4, kind: output, shape index: {}]   ;;  %s2917_s1 = inlined_call_operand.hbm [shape: s32[6], index: 1, kind: input, shape index: {}]  }
   0x1   :  { %2948 = sst [smem:[#allocation18_spill]] %s2914_s2  ;;  %s10_s17 = sshll.u32 %s2913_s0, 4  ;;  %s11_s17 = int_to_ptr.hbm [resolvable:$true] %s10_s17 }
   0x2   :  { %s15_s20 = sshll.u32 %s2917_s1, 4  ;;  %s16_s20 = int_to_ptr.hbm [resolvable:$true] %s15_s20 }
   0x3   :  { %13 = dma.hbm_to_smem %s11_s17, 16, %s1639_s21, [#allocation3] }
   0x4   :  { %18 = dma.hbm_to_smem %s16_s20, 16, %s1640_s22, [#allocation3] }
   0x5   :  { %1589 = dma.done.wait [#allocation3], 32 }
   0x6   :  { %1590 = vsyncadd [#allocation3], 4294967264 }
   0x7   :  { %21 = sfence }
   0x8   :  { %22 = vsyncpa [#allocation7], 0 }
   0x9   :  { %23 = vsyncpa [#allocation10], 0 }
   0xa   :  { %25 = vsyncpa [#allocation10 + $0x1], 0 }
   0xb   :  { %26 = vsyncpa [#allocation8], 0 }
   0xc   :  { %28 = vsyncpa [#allocation8 + $0x1], 0  ;;  %s1676_s23 = smov 0   ;;  %s1678_s0 = smov 0  }
   0xd   :  { %s1680_s24 = smov 0   ;;  %s1682_s1 = smov 0  }
   0xe   :  { %s1684_s25 = smov 0   ;;  %s1686_s26 = smov 0  }
   0xf   :  { %s1688_s27 = smov 0   ;;  %s1690_s28 = smov 0  }
  0x10 LB: > { %s1192_s29 = sadd.s32 4294967295, %s1633_s28   ;;  %s1193_s30 = sadd.s32 4294967294, %s1633_s28   ;;  %s1633_s28 = sphi %s1690_s28, %s34_s28   ;;  %s1629_s27 = sphi %s1688_s27, %s2998_s27   ;;  %s1625_s26 = sphi %s1686_s26, %s2997_s26   ;;  %s1621_s25 = sphi %s1684_s25, %s2996_s25   ;;  %s1617_s1 = sphi %s1682_s1, %s2995_s1   ;;  %s1613_s24 = sphi %s1680_s24, %s2994_s24   ;;  %s1609_s0 = sphi %s1678_s0, %s2993_s0   ;;  %s1605_s23 = sphi %s1676_s23, %s2992_s23  }
  0x11   : > { %p89_p0 = scmp.ne.s32.totalorder %s1609_s0, %s1605_s23  ;;  %p1720_p1 = scmp.eq.s32.totalorder %s1192_s29, 0 }
  0x12   : > { %p1724_p2 = scmp.eq.s32.totalorder %s1192_s29, 5  ;;  %p121_p3 = scmp.eq.s32.totalorder %s1193_s30, 5 }
  0x13   : > { %p1730_p4 = por %p1720_p1, %p89_p0  ;;  %p1194_p5 = scmp.ge.s32.totalorder %s1633_s28, 1 }
  0x14   : > { %p1735_p6 = por %p121_p3, %p89_p0  ;;  %p128_p7 = scmp.lt.s32.totalorder %s1633_s28, 7 }
  0x15   : > { %s2954_s2 = sld [smem:[#allocation18_spill]]  ;;  %s1641_s13 = smov [#allocation6]  }
  0x16   : > { %s2952_s8 = scalar_select %p1735_p6, 1, 0 }
  0x17   : > { %p1743_p8 = pnand %p1194_p5, %p128_p7  ;;  %s142_s14 = sshll.u32 %s1641_s13, 4  ;;  %s143_s14 = int_to_ptr.vmem [resolvable:$true] %s142_s14 }
  0x18   : > { %2953 = sst [smem:[#allocation16_spill]] %s2952_s8  ;;  %s43_s15 = sadd.s32 1, %s1625_s26 }
  0x19   : > { %p1347_p9 = pneg %p1743_p8  ;;  %p44_p11 = scmp.ge.s32.totalorder %s43_s15, 2 }
  0x1a   : > { %s46_s16 = sadd.s32 1, %s1629_s27  ;;  %s76_s17 = sadd.s32 1, %s1613_s24 }
  0x1b   : > { %s140_s11 = sshll.u32 %s2954_s2, 4  ;;  %p1348_p10 = pnand %p1347_p9, %p1720_p1  ;;  %s141_s11 = int_to_ptr.hbm [resolvable:$true] %s140_s11 }
  0x1c   : > { %p83_p12 = scmp.ne.s32.totalorder %s1613_s24, %s1609_s0  ;;  %s3000_s15 = smov (%p44_p11, %s43_s15), 0 }
  0x1d   : > { %1350 = dma.hbm_to_vmem [thread:$0]  (!%p1348_p10), %s141_s11, 256, %s143_s14, [#allocation7]  }
  0x1e   : > { %2956 = sst [smem:[#allocation17_spill]] %s3000_s15  ;;  %s3002_s16 = smov (!%p44_p11, %s46_s16), %s1629_s27 }
  0x1f   : > { %s72_s18 = ssub.s32 %s1625_s26, %s3000_s15  ;;  %p84_p13 = scmp.eq.s32.totalorder %s1633_s28, 0 }
  0x20   : > { %p48_p0 = scmp.ge.s32.totalorder %s3002_s16, 3  ;;  %p1764_p3 = por %p1724_p2, %p83_p12 }
  0x21   : > { %p1768_p5 = por %p84_p13, %p83_p12  ;;  %p1360_p7 = scmp.lt.s32.totalorder %s1633_s28, 6 }
  0x22   : > { %s3004_s16 = smov (%p48_p0, %s3002_s16), 0  ;;  %s153_s21 = sand.u32 1, %s1613_s24  }
  0x23   : > { %s1197_s22 = sshll.u32 %s1629_s27, 1  ;;  %s71_s29 = ssub.s32 %s1629_s27, %s3004_s16 }
  0x24   : > { %s73_s30 = sor.u32 %s72_s18, %s71_s29  ;;  %s160_s6 = sadd.s32 %s1625_s26, %s1197_s22 }
  0x25   : > { %p74_p9 = scmp.eq.s32.totalorder %s73_s30, 0  ;;  %s161_s11 = scalar_lea.hbm %s2915_s3, %s160_s6 }
  0x26   : > { %s156_s13 = scalar_lea.vmem [#allocation9], %s153_s21  ;;  %s163_s15 = sshll.u32 %s161_s11, 4  ;;  %s164_s15 = int_to_ptr.hbm [resolvable:$true] %s163_s15 }
  0x27   : > { %s165_s14 = sshll.u32 %s156_s13, 4  ;;  %p1352_p2 = pnand %p1360_p7, %p1768_p5  ;;  %s166_s14 = int_to_ptr.vmem [resolvable:$true] %s165_s14 }
  0x28   : > { %s1784_s2 = scalar_select %p74_p9, %s1613_s24, %s76_s17  }
  0x29   : > { %s154_s8 = scalar_lea.sflag [#allocation10], %s153_s21  ;;  %174 = sbr.rel (%p1743_p8) target bundleno = 335 (0x14f), region = 28 }
  0x2a   : > { %1354 = dma.hbm_to_vmem [thread:$0]  (!%p1352_p2), %s164_s15, 16, %s166_s14, %s154_s8  }
  0x2e   : > { %1592 = dma.done.wait (%p1720_p1), [#allocation7], 256  }
  0x2f   : > { %1594 = vsyncadd (%p1720_p1), [#allocation7], 4294967040  ;;  %s1797_s17 = sand.u32 1, %s1609_s0  }
  0x30   : > { %s182_s18 = scalar_lea.sflag [#allocation10], %s1797_s17  ;;  %s184_s20 = scalar_lea.vmem [#allocation9], %s1797_s17 }
  0x31   : > { %1596 = dma.done.wait (%p1730_p4), %s182_s18, 16  }
  0x32   : > { %1598 = vsyncadd (%p1730_p4), %s182_s18, 4294967280  ;;  %s1201_s8 = sshll.u32 %s1621_s25, 1  ;;  %s1200_s12 = sshll.u32 %s1797_s17, 3  ;;  %v1642_v0 = vmov 0.0   ;;  %v1814_v1 = vld [vmem:[%s184_s20] sm:$0x1] }
  0x33   : > { %s1808_s5 = sadd.s32 %s1617_s1, %s1201_s8  ;;  %210 = vst [vmem:[#allocation2] sm:$0xff] %v1642_v0  ;;  %s1817_s7 = scalar_lea.vmem [#allocation11], %s1200_s12 }
  0x34   : > { %s207_s15 = sld [smem:[#allocation4 + %s1808_s5]]  }
  0x35   : > { %s1812_s21 = sld [smem:[#allocation5 + %s1808_s5]] }
  0x3b   : > { %s211_s22 = sadd.s32 1, %s1812_s21 }
  0x3c   : > { %p1144_p1 = scmp.ge.s32.totalorder %s207_s15, %s211_s22 }
  0x3e   : > { %1145 = sbr.rel (%p1144_p1) target bundleno = 320 (0x140), region = 80 }
  0x43 LB: >> { %v219_v2 = vlaneseq  ;;  %s1202_s1 = sshll.u32 %s1637_s15, 8  ;;  %v1832_v5 = vperm.slane %v1814_v1, 0  ;;  %v1643_v22 = vmov 1.0   ;;  %v1644_v23 = vmov 0.0   ;;  %s1338_s25 = sshll.u32 %s1637_s15, 4  ;;  %s1637_s15 = sphi %s207_s15, %s215_s15  }
  0x44   : >> { %v1829_v4 = vstv %s1202_s1  ;;  %s2434_s29 = scalar_lea.vmem [#allocation6], %s1338_s25  ;;  %s215_s15 = sadd.s32 1, %s1637_s15  }
  0x45   : >> { %v1827_v3 = vshrl.u32 %v219_v2, 7  ;;  %p214_p4 = scmp.ge.s32.totalorder %s215_s15, %s211_s22 }
  0x47   : >> { %v235_v6 = vadd.s32 120, %v1827_v3  ;;  %v234_v7 = vadd.s32 112, %v1827_v3  ;;  %v233_v8 = vadd.s32 104, %v1827_v3  ;;  %v232_v9 = vadd.s32 96, %v1827_v3 }
  0x48   : >> { %v231_v10 = vadd.s32 88, %v1827_v3  ;;  %v230_v11 = vadd.s32 80, %v1827_v3  ;;  %v229_v12 = vadd.s32 72, %v1827_v3  ;;  %v228_v13 = vadd.s32 64, %v1827_v3 }
  0x49   : >> { %v1843_v14 = vadd.s32 %v1829_v4, %v235_v6  ;;  %v1846_v15 = vadd.s32 %v1829_v4, %v234_v7  ;;  %v1849_v16 = vadd.s32 %v1829_v4, %v233_v8  ;;  %v1852_v17 = vadd.s32 %v1829_v4, %v232_v9 }
  0x4a   : >> { %v1855_v18 = vadd.s32 %v1829_v4, %v231_v10  ;;  %v1858_v19 = vadd.s32 %v1829_v4, %v230_v11  ;;  %v1861_v20 = vadd.s32 %v1829_v4, %v229_v12  ;;  %v1864_v21 = vadd.s32 %v1829_v4, %v228_v13 }
  0x4b   : >> { %vm301_vm0 = vcmp.eq.s32.totalorder %v1843_v14, %v1832_v5  ;;  %vm300_vm1 = vcmp.eq.s32.totalorder %v1846_v15, %v1832_v5  ;;  %vm299_vm2 = vcmp.eq.s32.totalorder %v1849_v16, %v1832_v5  ;;  %vm298_vm3 = vcmp.eq.s32.totalorder %v1852_v17, %v1832_v5  ;;  %v386_v16 = vld [vmem:[%s2434_s29] sm:$0xff] }
  0x4c   : >> { %1237 = vmatpush.msk.msra.mxu0 %vm301_vm0, %v1643_v22  ;;  %v1218_v24 = vsel %vm301_vm0, 1.0, %v1644_v23  ;;  %v1217_v25 = vsel %vm300_vm1, 1.0, %v1644_v23  ;;  %1253 = vmatpush.msk.msra.mxu3 %vm301_vm0, %v1643_v22  ;;  %vm297_vm4 = vcmp.eq.s32.totalorder %v1855_v18, %v1832_v5  ;;  %v1216_v26 = vsel %vm299_vm2, 1.0, %v1644_v23 }
  0x4d   : >> { %v1896_v27 = vsub.f32 %v1218_v24, %v1218_v24  ;;  %v1898_v28 = vsub.f32 %v1217_v25, %v1217_v25  ;;  %v1900_v29 = vsub.f32 %v1216_v26, %v1216_v26  ;;  %vm296_vm5 = vcmp.eq.s32.totalorder %v1858_v19, %v1832_v5 }
  0x4e   : >> { %1238 = vmatpush.msk.msra.mxu0 %vm300_vm1, %v1643_v22  ;;  %1254 = vmatpush.msk.msra.mxu3 %vm300_vm1, %v1643_v22  ;;  %v1215_v30 = vsel %vm298_vm3, 1.0, %v1644_v23  ;;  %vm295_vm6 = vcmp.eq.s32.totalorder %v1861_v20, %v1832_v5  ;;  %v1214_v31 = vsel %vm297_vm4, 1.0, %v1644_v23  ;;  %vm294_vm7 = vcmp.eq.s32.totalorder %v1864_v21, %v1832_v5 }
  0x4f   : >> { %532 = vmatpush.msra.mxu2 %v1896_v27  ;;  %v431_v32 = vand.u32 4294901760, %v1896_v27  ;;  %v437_v33 = vand.u32 4294901760, %v1898_v28  ;;  %v1927_v34 = vsub.f32 %v1215_v30, %v1215_v30  ;;  %v443_v35 = vand.u32 4294901760, %v1900_v29 }
  0x50   : >> { %1239 = vmatpush.msk.msra.mxu0 %vm299_vm2, %v1643_v22  ;;  %1255 = vmatpush.msk.msra.mxu3 %vm299_vm2, %v1643_v22  ;;  %v1938_v36 = vsub.f32 %v1214_v31, %v1214_v31  ;;  %v1213_v37 = vsel %vm296_vm5, 1.0, %v1644_v23  ;;  %v227_v38 = vadd.s32 56, %v1827_v3  ;;  %v1212_v39 = vsel %vm295_vm6, 1.0, %v1644_v23 }
  0x51   : >> { %535 = vmatpush.msra.mxu2 %v1898_v28  ;;  %v432_v40 = vsub.f32 %v1896_v27, %v431_v32  ;;  %v438_v41 = vsub.f32 %v1898_v28, %v437_v33  ;;  %v444_v42 = vsub.f32 %v1900_v29, %v443_v35  ;;  %v449_v43 = vand.u32 4294901760, %v1927_v34 }
  0x52   : >> { %1240 = vmatpush.msk.msra.mxu0 %vm298_vm3, %v1643_v22  ;;  %1256 = vmatpush.msk.msra.mxu3 %vm298_vm3, %v1643_v22  ;;  %v1968_v44 = vsub.f32 %v1213_v37, %v1213_v37  ;;  %v1971_v45 = vadd.s32 %v1829_v4, %v227_v38  ;;  %v455_v46 = vand.u32 4294901760, %v1938_v36  ;;  %v1974_v47 = vsub.f32 %v1212_v39, %v1212_v39 }
  0x53   : >> { %v433_v48 = vand.u32 4294901760, %v432_v40  ;;  %538 = vmatpush.msra.mxu2 %v1900_v29  ;;  %v439_v49 = vand.u32 4294901760, %v438_v41  ;;  %v445_v50 = vand.u32 4294901760, %v444_v42  ;;  %v450_v51 = vsub.f32 %v1927_v34, %v449_v43 }
  0x54   : >> { %1241 = vmatpush.msk.msra.mxu0 %vm297_vm4, %v1643_v22  ;;  %1257 = vmatpush.msk.msra.mxu3 %vm297_vm4, %v1643_v22  ;;  %vm293_vm8 = vcmp.eq.s32.totalorder %v1971_v45, %v1832_v5  ;;  %v456_v52 = vsub.f32 %v1938_v36, %v455_v46  ;;  %v226_v53 = vadd.s32 48, %v1827_v3  ;;  %v461_v54 = vand.u32 4294901760, %v1968_v44 }
  0x55   : >> { %434 = vmatpush.msra.mxu1 %v433_v48  ;;  %541 = vmatpush.msra.mxu2 %v1927_v34  ;;  %v451_v55 = vand.u32 4294901760, %v450_v51  ;;  %v1211_v56 = vsel %vm294_vm7, 1.0, %v1644_v23  ;;  %v225_v57 = vadd.s32 40, %v1827_v3  ;;  %v2934_v58 = vand.u32 4294901760, %v1974_v47 }
  0x56   : >> { %1242 = vmatpush.msk.msra.mxu0 %vm296_vm5, %v1643_v22  ;;  %v457_v59 = vand.u32 4294901760, %v456_v52  ;;  %1258 = vmatpush.msk.msra.mxu3 %vm296_vm5, %v1643_v22  ;;  %v2011_v60 = vadd.s32 %v1829_v4, %v226_v53  ;;  %v462_v61 = vsub.f32 %v1968_v44, %v461_v54  ;;  %v2016_v62 = vsub.f32 %v1211_v56, %v1211_v56 }
  0x57   : >> { %440 = vmatpush.msra.mxu1 %v439_v49  ;;  %544 = vmatpush.msra.mxu2 %v1938_v36  ;;  %v2020_v63 = vadd.s32 %v1829_v4, %v225_v57  ;;  %v468_v0 = vsub.f32 %v1974_v47, %v2934_v58  ;;  %v1210_v2 = vsel %vm293_vm8, 1.0, %v1644_v23  ;;  %v224_v6 = vadd.s32 32, %v1827_v3 }
  0x58   : >> { %1243 = vmatpush.msk.msra.mxu0 %vm295_vm6, %v1643_v22  ;;  %vm2938_vm9 = vcmp.eq.s32.totalorder %v2011_v60, %v1832_v5  ;;  %v463_v7 = vand.u32 4294901760, %v462_v61  ;;  %1259 = vmatpush.msk.msra.mxu3 %vm295_vm6, %v1643_v22  ;;  %v2040_v8 = vsub.f32 %v1210_v2, %v1210_v2  ;;  %v2933_v9 = vand.u32 4294901760, %v2016_v62 }
  0x59   : >> { %446 = vmatpush.msra.mxu1 %v445_v50  ;;  %547 = vmatpush.msra.mxu2 %v1968_v44  ;;  %vm2936_vm10 = vcmp.eq.s32.totalorder %v2020_v63, %v1832_v5  ;;  %v469_v10 = vand.u32 4294901760, %v468_v0  ;;  %v2047_v11 = vadd.s32 %v1829_v4, %v224_v6  ;;  %v1209_v12 = vsel %vm2938_vm9, 1.0, %v1644_v23 }
  0x5a   : >> { %1244 = vmatpush.msk.msra.mxu0 %vm294_vm7, %v1643_v22  ;;  %1260 = vmatpush.msk.msra.mxu3 %vm294_vm7, %v1643_v22  ;;  %v474_v13 = vsub.f32 %v2016_v62, %v2933_v9  ;;  %v2064_v24 = vsub.f32 %v1209_v12, %v1209_v12  ;;  %v223_v25 = vadd.s32 24, %v1827_v3  ;;  %v2930_v26 = vand.u32 4294901760, %v2040_v8 }
  0x5b   : >> { %452 = vmatpush.msra.mxu1 %v451_v55  ;;  %550 = vmatpush.msra.mxu2 %v1974_v47  ;;  %vm2920_vm11 = vcmp.eq.s32.totalorder %v2047_v11, %v1832_v5  ;;  %v1208_v30 = vsel %vm2936_vm10, 1.0, %v1644_v23  ;;  %v222_v31 = vadd.s32 16, %v1827_v3  ;;  %v221_v37 = vadd.s32 8, %v1827_v3 }
  0x5c   : >> { %1245 = vmatpush.msk.msra.mxu0 %vm293_vm8, %v1643_v22  ;;  %v475_v38 = vand.u32 4294901760, %v474_v13  ;;  %1261 = vmatpush.msk.msra.mxu3 %vm293_vm8, %v1643_v22  ;;  %v2086_v39 = vadd.s32 %v1829_v4, %v223_v25  ;;  %v480_v40 = vsub.f32 %v2040_v8, %v2930_v26  ;;  %v2091_v41 = vsub.f32 %v1208_v30, %v1208_v30 }
  0x5d   : >> { %458 = vmatpush.msra.mxu1 %v457_v59  ;;  %553 = vmatpush.msra.mxu2 %v2016_v62  ;;  %v2095_v42 = vadd.s32 %v1829_v4, %v222_v31  ;;  %v2929_v48 = vand.u32 4294901760, %v2064_v24  ;;  %v1207_v49 = vsel %vm2920_vm11, 1.0, %v1644_v23  ;;  %v2103_v50 = vadd.s32 %v1829_v4, %v221_v37 }
  0x5e   : >> { %1246 = vmatpush.msk.msra.mxu0 %vm2938_vm9, %v1643_v22  ;;  %vm2926_vm12 = vcmp.eq.s32.totalorder %v2086_v39, %v1832_v5  ;;  %v481_v51 = vand.u32 4294901760, %v480_v40  ;;  %1262 = vmatpush.msk.msra.mxu3 %vm2938_vm9, %v1643_v22  ;;  %v2115_v52 = vsub.f32 %v1207_v49, %v1207_v49  ;;  %v2923_v53 = vand.u32 4294901760, %v2091_v41 }
  0x5f   : >> { %464 = vmatpush.msra.mxu1 %v463_v7  ;;  %556 = vmatpush.msra.mxu2 %v2040_v8  ;;  %vm2925_vm13 = vcmp.eq.s32.totalorder %v2095_v42, %v1832_v5  ;;  %v486_v55 = vsub.f32 %v2064_v24, %v2929_v48  ;;  %vm2935_vm14 = vcmp.eq.s32.totalorder %v2103_v50, %v1832_v5  ;;  %v1206_v56 = vsel %vm2926_vm12, 1.0, %v1644_v23 }
  0x60   : >> { %1247 = vmatpush.msk.msra.mxu0 %vm2936_vm10, %v1643_v22  ;;  %1263 = vmatpush.msk.msra.mxu3 %vm2936_vm10, %v1643_v22  ;;  %v492_v57 = vsub.f32 %v2091_v41, %v2923_v53  ;;  %v2141_v59 = vsub.f32 %v1206_v56, %v1206_v56  ;;  %v2145_v61 = vadd.s32 %v1829_v4, %v1827_v3  ;;  %v2922_v0 = vand.u32 4294901760, %v2115_v52 }
  0x61   : >> { %470 = vmatpush.msra.mxu1 %v469_v10  ;;  %559 = vmatpush.msra.mxu2 %v2064_v24  ;;  %v487_v2 = vand.u32 4294901760, %v486_v55  ;;  %v1205_v6 = vsel %vm2925_vm13, 1.0, %v1644_v23  ;;  %v1204_v7 = vsel %vm2935_vm14, 1.0, %v1644_v23  ;;  %v251_v12 = vadd.s32 248, %v1827_v3 }
  0x62   : >> { %1248 = vmatpush.msk.msra.mxu0 %vm2920_vm11, %v1643_v22  ;;  %v493_v10 = vand.u32 4294901760, %v492_v57  ;;  %1264 = vmatpush.msk.msra.mxu3 %vm2920_vm11, %v1643_v22  ;;  %vm2931_vm15 = vcmp.eq.s32.totalorder %v2145_v61, %v1832_v5  ;;  %v498_v13 = vsub.f32 %v2115_v52, %v2922_v0  ;;  %v2171_v25 = vsub.f32 %v1205_v6, %v1205_v6 }
  0x63   : >> { %476 = vmatpush.msra.mxu1 %v475_v38  ;;  %562 = vmatpush.msra.mxu2 %v2091_v41  ;;  %v2921_v30 = vand.u32 4294901760, %v2141_v59  ;;  %v2175_v31 = vsub.f32 %v1204_v7, %v1204_v7  ;;  %v1203_v37 = vsel %vm2931_vm15, 1.0, %v1644_v23  ;;  %v2182_v40 = vadd.s32 %v1829_v4, %v251_v12 }
  0x64   : >> { %1249 = vmatpush.msk.msra.mxu0 %vm2926_vm12, %v1643_v22  ;;  %v499_v38 = vand.u32 4294901760, %v498_v13  ;;  %1265 = vmatpush.msk.msra.mxu3 %vm2926_vm12, %v1643_v22  ;;  %v2924_v49 = vand.u32 4294901760, %v2171_v25  ;;  %v2193_v55 = vsub.f32 %v1203_v37, %v1203_v37  ;;  %v250_v56 = vadd.s32 240, %v1827_v3 }
  0x65   : >> { %482 = vmatpush.msra.mxu1 %v481_v51  ;;  %565 = vmatpush.msra.mxu2 %v2115_v52  ;;  %v504_v57 = vsub.f32 %v2141_v59, %v2921_v30  ;;  %vm2937_vm11 = vcmp.eq.s32.totalorder %v2182_v40, %v1832_v5  ;;  %v2928_v6 = vand.u32 4294901760, %v2175_v31  ;;  %v249_v7 = vadd.s32 232, %v1827_v3 }
  0x66   : >> { %1250 = vmatpush.msk.msra.mxu0 %vm2925_vm13, %v1643_v22  ;;  %1266 = vmatpush.msk.msra.mxu3 %vm2925_vm13, %v1643_v22  ;;  %v510_v51 = vsub.f32 %v2171_v25, %v2924_v49  ;;  %v2216_v12 = vadd.s32 %v1829_v4, %v250_v56  ;;  %v1234_v13 = vsel %vm2937_vm11, 1.0, %v1644_v23  ;;  %v2927_v37 = vand.u32 4294901760, %v2193_v55 }
  0x67   : >> { %488 = vmatpush.msra.mxu1 %v487_v2  ;;  %568 = vmatpush.msra.mxu2 %v2141_v59  ;;  %v505_v30 = vand.u32 4294901760, %v504_v57  ;;  %v516_v0 = vsub.f32 %v2175_v31, %v2928_v6  ;;  %v2227_v53 = vsub.f32 %v1234_v13, %v1234_v13  ;;  %v2230_v56 = vadd.s32 %v1829_v4, %v249_v7 }
  0x68   : >> { %1251 = vmatpush.msk.msra.mxu0 %vm2935_vm14, %v1643_v22  ;;  %v511_v49 = vand.u32 4294901760, %v510_v51  ;;  %1267 = vmatpush.msk.msra.mxu3 %vm2935_vm14, %v1643_v22  ;;  %vm316_vm13 = vcmp.eq.s32.totalorder %v2216_v12, %v1832_v5  ;;  %v522_v2 = vsub.f32 %v2193_v55, %v2927_v37  ;;  %v248_v57 = vadd.s32 224, %v1827_v3 }
  0x69   : >> { %494 = vmatpush.msra.mxu1 %v493_v10  ;;  %571 = vmatpush.msra.mxu2 %v2171_v25  ;;  %v517_v7 = vand.u32 4294901760, %v516_v0  ;;  %v2932_v51 = vand.u32 4294901760, %v2227_v53  ;;  %vm315_vm12 = vcmp.eq.s32.totalorder %v2230_v56, %v1832_v5  ;;  %v1233_v13 = vsel %vm316_vm13, 1.0, %v1644_v23 }
  0x6a   : >> { %1252 = vmatpush.msk.msra.mxu0 %vm2931_vm15, %v1643_v22  ;;  %1268 = vmatpush.msk.msra.mxu3 %vm2931_vm15, %v1643_v22  ;;  %v523_v0 = vand.u32 4294901760, %v522_v2  ;;  %v2262_v10 = vsub.f32 %v1233_v13, %v1233_v13  ;;  %v2265_v37 = vadd.s32 %v1829_v4, %v248_v57  ;;  %v1232_v6 = vsel %vm315_vm12, 1.0, %v1644_v23 }
  0x6b   : >> { %500 = vmatpush.msra.mxu1 %v499_v38  ;;  %v773_v48 = vsub.f32 %v2227_v53, %v2932_v51  ;;  %v2276_v26 = vsub.f32 %v1232_v6, %v1232_v6  ;;  %v247_v2 = vadd.s32 216, %v1827_v3  ;;  %v246_v57 = vadd.s32 208, %v1827_v3  ;;  %574 = vmatpush.msra.mxu2 %v2175_v31 }
  0x6c   : >> { %626 = vmatpush.msrb.mxu0 %v431_v32  ;;  %v778_v13 = vand.u32 4294901760, %v2262_v10  ;;  %vm314_vm15 = vcmp.eq.s32.totalorder %v2265_v37, %v1832_v5  ;;  %v245_v27 = vadd.s32 200, %v1827_v3  ;;  %v244_v32 = vadd.s32 192, %v1827_v3 }
  0x6d   : >> { %506 = vmatpush.msra.mxu1 %v505_v30  ;;  %v774_v38 = vand.u32 4294901760, %v773_v48  ;;  %v784_v6 = vand.u32 4294901760, %v2276_v26  ;;  %v2290_v51 = vadd.s32 %v1829_v4, %v247_v2  ;;  %v1231_v9 = vsel %vm314_vm15, 1.0, %v1644_v23  ;;  %577 = vmatpush.msra.mxu2 %v2193_v55 }
  0x6e   : >> { %630 = vmatpush.msrb.mxu0 %v437_v33  ;;  %v779_v30 = vsub.f32 %v2262_v10, %v778_v13  ;;  %v2300_v58 = vsub.f32 %v1231_v9, %v1231_v9  ;;  %v2303_v28 = vadd.s32 %v1829_v4, %v246_v57  ;;  %v2306_v33 = vadd.s32 %v1829_v4, %v245_v27 }
  0x6f   : >> { %512 = vmatpush.msra.mxu1 %v511_v49  ;;  %v785_v48 = vsub.f32 %v2276_v26, %v784_v6  ;;  %vm313_vm14 = vcmp.eq.s32.totalorder %v2290_v51, %v1832_v5  ;;  %v2316_v9 = vadd.s32 %v1829_v4, %v244_v32  ;;  %v243_v2 = vadd.s32 184, %v1827_v3  ;;  %1285 = vmatpush.msk.msrb.mxu2 %vm2937_vm11, %v1643_v22 }
  0x70   : >> { %634 = vmatpush.msrb.mxu0 %v443_v35  ;;  %775 = vmatpush.msrb.mxu3 %v774_v38  ;;  %v780_v29 = vand.u32 4294901760, %v779_v30  ;;  %v790_v35 = vand.u32 4294901760, %v2300_v58  ;;  %vm312_vm10 = vcmp.eq.s32.totalorder %v2303_v28, %v1832_v5  ;;  %v1230_v49 = vsel %vm313_vm14, 1.0, %v1644_v23 }
  0x71   : >> { %518 = vmatpush.msra.mxu1 %v517_v7  ;;  %v786_v57 = vand.u32 4294901760, %v785_v48  ;;  %v2332_v27 = vsub.f32 %v1230_v49, %v1230_v49  ;;  %vm311_vm11 = vcmp.eq.s32.totalorder %v2306_v33, %v1832_v5  ;;  %v1229_v32 = vsel %vm312_vm10, 1.0, %v1644_v23  ;;  %1286 = vmatpush.msk.msrb.mxu2 %vm316_vm13, %v1643_v22 }
  0x72   : >> { %638 = vmatpush.msrb.mxu0 %v449_v43  ;;  %781 = vmatpush.msrb.mxu3 %v780_v29  ;;  %v791_v34 = vsub.f32 %v2300_v58, %v790_v35  ;;  %v2347_v43 = vsub.f32 %v1229_v32, %v1229_v32  ;;  %vm310_vm9 = vcmp.eq.s32.totalorder %v2316_v9, %v1832_v5  ;;  %v1228_v7 = vsel %vm311_vm11, 1.0, %v1644_v23 }
  0x73   : >> { %524 = vmatpush.msra.mxu1 %v523_v0  ;;  %v2940_v38 = vand.u32 4294901760, %v2332_v27  ;;  %v2359_v30 = vsub.f32 %v1228_v7, %v1228_v7  ;;  %v2362_v48 = vadd.s32 %v1829_v4, %v243_v2  ;;  %v1227_v29 = vsel %vm310_vm9, 1.0, %v1644_v23  ;;  %1287 = vmatpush.msk.msrb.mxu2 %vm315_vm12, %v1643_v22 }
  0x74   : >> { %642 = vmatpush.msrb.mxu0 %v455_v46  ;;  %v792_v36 = vand.u32 4294901760, %v791_v34  ;;  %v2939_v46 = vand.u32 4294901760, %v2347_v43  ;;  %v2377_v0 = vsub.f32 %v1227_v29, %v1227_v29  ;;  %v242_v2 = vadd.s32 176, %v1827_v3  ;;  %787 = vmatpush.msrb.mxu3 %v786_v57 }
  0x75   : >> { %1269 = vmatpush.msk.msrb.mxu1 %vm301_vm0, %v1643_v22  ;;  %v797_v14 = vsub.f32 %v2332_v27, %v2940_v38  ;;  %v808_v49 = vand.u32 4294901760, %v2359_v30  ;;  %vm309_vm0 = vcmp.eq.s32.totalorder %v2362_v48, %v1832_v5  ;;  %v241_v32 = vadd.s32 168, %v1827_v3  ;;  %1288 = vmatpush.msk.msrb.mxu2 %vm314_vm15, %v1643_v22 }
  0x76   : >> { %646 = vmatpush.msrb.mxu0 %v461_v54  ;;  %v803_v44 = vsub.f32 %v2347_v43, %v2939_v46  ;;  %v2941_v54 = vand.u32 4294901760, %v2377_v0  ;;  %v2402_v57 = vadd.s32 %v1829_v4, %v242_v2  ;;  %v1226_v15 = vsel %vm309_vm0, 1.0, %v1644_v23  ;;  %793 = vmatpush.msrb.mxu3 %v792_v36 }
  0x77   : >> { %1270 = vmatpush.msk.msrb.mxu1 %vm300_vm1, %v1643_v22  ;;  %v2959_v34 = vand.u32 4294901760, %v1974_v47  ;;  %v798_v7 = vand.u32 4294901760, %v797_v14  ;;  %v809_v29 = vsub.f32 %v2359_v30, %v808_v49  ;;  %v2413_v46 = vsub.f32 %v1226_v15, %v1226_v15  ;;  %1289 = vmatpush.msk.msrb.mxu2 %vm313_vm14, %v1643_v22 }
  0x78   : >> { %v2416_v38 = vadd.s32 %v1829_v4, %v241_v32  ;;  %v804_v47 = vand.u32 4294901760, %v803_v44  ;;  %v815_v36 = vsub.f32 %v2377_v0, %v2941_v54  ;;  %vm308_vm1 = vcmp.eq.s32.totalorder %v2402_v57, %v1832_v5  ;;  %v382_v57 = vld [vmem:[#allocation2] sm:$0xff] }
  0x79   : >> { %650 = vmatpush.msrb.mxu0 %v2959_v34  ;;  %1271 = vmatpush.msk.msrb.mxu1 %vm299_vm2, %v1643_v22  ;;  %v240_v2 = vadd.s32 160, %v1827_v3  ;;  %v2960_v14 = vand.u32 4294901760, %v2016_v62  ;;  %v810_v32 = vand.u32 4294901760, %v809_v29  ;;  %v2942_v44 = vand.u32 4294901760, %v2413_v46 }
  0x7a   : >> { %799 = vmatpush.msrb.mxu3 %v798_v7  ;;  %vm307_vm2 = vcmp.eq.s32.totalorder %v2416_v38, %v1832_v5  ;;  %v1225_v15 = vsel %vm308_vm1, 1.0, %v1644_v23  ;;  %1290 = vmatpush.msk.msrb.mxu2 %vm312_vm10, %v1643_v22  ;;  %v816_v62 = vand.u32 4294901760, %v815_v36  ;;  %v239_v36 = vadd.s32 152, %v1827_v3 }
  0x7b   : >> { %654 = vmatpush.msrb.mxu0 %v2960_v14  ;;  %1272 = vmatpush.msk.msrb.mxu1 %vm298_vm3, %v1643_v22  ;;  %v2454_v34 = vsub.f32 %v1225_v15, %v1225_v15  ;;  %v2457_v7 = vadd.s32 %v1829_v4, %v240_v2  ;;  %v1224_v29 = vsel %vm307_vm2, 1.0, %v1644_v23  ;;  %v2961_v14 = vand.u32 4294901760, %v2040_v8 }
  0x7c   : >> { %805 = vmatpush.msrb.mxu3 %v804_v47  ;;  %v821_v17 = vsub.f32 %v2413_v46, %v2942_v44  ;;  %v2468_v54 = vsub.f32 %v1224_v29, %v1224_v29  ;;  %v2471_v15 = vand.u32 4294901760, %v386_v16  ;;  %1291 = vmatpush.msk.msrb.mxu2 %vm311_vm11, %v1643_v22  ;;  %v238_v47 = vadd.s32 144, %v1827_v3 }
  0x7d   : >> { %658 = vmatpush.msrb.mxu0 %v2961_v14  ;;  %1273 = vmatpush.msk.msrb.mxu1 %vm297_vm4, %v1643_v22  ;;  %v2943_v8 = vand.u32 4294901760, %v2454_v34  ;;  %vm306_vm3 = vcmp.eq.s32.totalorder %v2457_v7, %v1832_v5  ;;  %v2962_v2 = vand.u32 4294901760, %v2064_v24  ;;  %v2489_v14 = vadd.s32 %v1829_v4, %v239_v36 }
  0x7e   : >> { %811 = vmatpush.msrb.mxu3 %v810_v32  ;;  %v822_v29 = vand.u32 4294901760, %v821_v17  ;;  %v2944_v18 = vand.u32 4294901760, %v2468_v54  ;;  %v1223_v44 = vsel %vm306_vm3, 1.0, %v1644_v23  ;;  %1292 = vmatpush.msk.msrb.mxu2 %vm310_vm9, %v1643_v22  ;;  %v2509_v17 = vsub.f32 %v386_v16, %v2471_v15 }
  0x7f   : >> { %662 = vmatpush.msrb.mxu0 %v2962_v2  ;;  %1274 = vmatpush.msk.msrb.mxu1 %vm296_vm5, %v1643_v22  ;;  %v827_v24 = vsub.f32 %v2454_v34, %v2943_v8  ;;  %v2506_v32 = vsub.f32 %v1223_v44, %v1223_v44  ;;  %v237_v36 = vadd.s32 136, %v1827_v3  ;;  %v2963_v19 = vand.u32 4294901760, %v2091_v41 }
  0x80   : >> { %817 = vmatpush.msrb.mxu3 %v816_v62  ;;  %v833_v2 = vsub.f32 %v2468_v54, %v2944_v18  ;;  %vm2946_vm4 = vcmp.eq.s32.totalorder %v2489_v14, %v1832_v5  ;;  %v2520_v8 = vadd.s32 %v1829_v4, %v238_v47  ;;  %v236_v44 = vadd.s32 128, %v1827_v3  ;;  %1293 = vmatpush.msk.msrb.mxu2 %vm309_vm0, %v1643_v22  ;;  %v387_v62 = vld [vmem:[%s2434_s29 + $0x8] sm:$0xff] }
  0x81   : >> { %666 = vmatpush.msrb.mxu0 %v2963_v19  ;;  %1275 = vmatpush.msk.msrb.mxu1 %vm295_vm6, %v1643_v22  ;;  %v828_v41 = vand.u32 4294901760, %v827_v24  ;;  %v2945_v16 = vand.u32 4294901760, %v2506_v32  ;;  %v422_v19 = vand.u32 4294901760, %v2509_v17  ;;  %v1222_v3 = vsel %vm2946_vm4, 1.0, %v1644_v23 }
  0x82   : >> { %v2964_v47 = vand.u32 4294901760, %v2115_v52  ;;  %823 = vmatpush.msrb.mxu3 %v822_v29  ;;  %v834_v20 = vand.u32 4294901760, %v833_v2  ;;  %vm304_vm5 = vcmp.eq.s32.totalorder %v2520_v8, %v1832_v5  ;;  %v2542_v18 = vsub.f32 %v1222_v3, %v1222_v3  ;;  %1294 = vmatpush.msk.msrb.mxu2 %vm308_vm1, %v1643_v22 }
  0x83   : >> { %v2545_v24 = vadd.s32 %v1829_v4, %v237_v36  ;;  %1276 = vmatpush.msk.msrb.mxu1 %vm294_vm7, %v1643_v22  ;;  %v839_v52 = vsub.f32 %v2506_v32, %v2945_v16  ;;  %v423_v29 = vsub.f32 %v2509_v17, %v422_v19  ;;  %v1221_v36 = vsel %vm304_vm5, 1.0, %v1644_v23  ;;  %580 = vmatmul.f32.vlgmr.msra.gmra.mxu2 %v2509_v17 }
  0x84   : >> { %670 = vmatpush.msrb.mxu0 %v2964_v47  ;;  %v2566_v21 = vadd.s32 %v1829_v4, %v236_v44  ;;  %v2965_v2 = vand.u32 4294901760, %v2141_v59  ;;  %829 = vmatpush.msrb.mxu3 %v828_v41  ;;  %v2570_v3 = vand.u32 4294901760, %v387_v62  ;;  %v844_v47 = vand.u32 4294901760, %v2542_v18 }
  0x85   : >> { %vm303_vm6 = vcmp.eq.s32.totalorder %v2545_v24, %v1832_v5  ;;  %v2575_v16 = vsub.f32 %v1221_v36, %v1221_v36  ;;  %1277 = vmatpush.msk.msrb.mxu1 %vm293_vm8, %v1643_v22  ;;  %1295 = vmatpush.msk.msrb.mxu2 %vm307_vm2, %v1643_v22  ;;  %v840_v4 = vand.u32 4294901760, %v839_v52  ;;  %v2966_v44 = vand.u32 4294901760, %v2171_v25 }
  0x86   : >> { %674 = vmatpush.msrb.mxu0 %v2965_v2  ;;  %vm2947_vm7 = vcmp.eq.s32.totalorder %v2566_v21, %v1832_v5  ;;  %v1220_v59 = vsel %vm303_vm6, 1.0, %v1644_v23  ;;  %835 = vmatpush.msrb.mxu3 %v834_v20  ;;  %v845_v45 = vsub.f32 %v2542_v18, %v844_v47  ;;  %vm2967_vm8 = vcmp.eq.s32.totalorder %v2011_v60, %v1832_v5 }
  0x87   : >> { %v850_v41 = vand.u32 4294901760, %v2575_v16  ;;  %v2597_v36 = vsub.f32 %v1220_v59, %v1220_v59  ;;  %v1219_v52 = vsel %vm2947_vm7, 1.0, %v1644_v23  ;;  %1278 = vmatpush.msk.msrb.mxu1 %vm2967_vm8, %v1643_v22  ;;  %1296 = vmatpush.msk.msrb.mxu2 %vm306_vm3, %v1643_v22  ;;  %v424_v25 = vand.u32 4294901760, %v423_v29 }
  0x88   : >> { %678 = vmatpush.msrb.mxu0 %v2966_v44  ;;  %v2611_v20 = vsub.f32 %v1219_v52, %v1219_v52  ;;  %v2968_v2 = vand.u32 4294901760, %v2175_v31  ;;  %841 = vmatpush.msrb.mxu3 %v840_v4  ;;  %v846_v59 = vand.u32 4294901760, %v845_v45  ;;  %v2620_v44 = vsub.f32 %v387_v62, %v2570_v3 }
  0x89   : >> { %v851_v23 = vsub.f32 %v2575_v16, %v850_v41  ;;  %v856_v60 = vand.u32 4294901760, %v2597_v36  ;;  %vm2969_vm8 = vcmp.eq.s32.totalorder %v2020_v63, %v1832_v5  ;;  %1297 = vmatpush.msk.msrb.mxu2 %vm2946_vm4, %v1643_v22  ;;  %v2970_v29 = vand.u32 4294901760, %v2193_v55  ;;  %425 = vmatmul.f32.vlgmr.msra.gmra.mxu0 %v424_v25 }
  0x8a   : >> { %682 = vmatpush.msrb.mxu0 %v2968_v2  ;;  %1279 = vmatpush.msk.msrb.mxu1 %vm2969_vm8, %v1643_v22  ;;  %v862_v31 = vand.u32 4294901760, %v2611_v20  ;;  %vm2971_vm8 = vcmp.eq.s32.totalorder %v2047_v11, %v1832_v5  ;;  %v763_v45 = vand.u32 4294901760, %v2620_v44  ;;  %vm2972_vm4 = vcmp.eq.s32.totalorder %v2086_v39, %v1832_v5 }
  0x8b   : >> { %847 = vmatpush.msrb.mxu3 %v846_v59  ;;  %v852_v4 = vand.u32 4294901760, %v851_v23  ;;  %v857_v62 = vsub.f32 %v2597_v36, %v856_v60  ;;  %1298 = vmatpush.msk.msrb.mxu2 %vm304_vm5, %v1643_v22  ;;  %v2974_v52 = vand.u32 4294901760, %v2227_v53  ;;  %v2985_v12 = vand.u32 4294901760, %v2506_v32 }
  0x8c   : >> { %686 = vmatpush.msrb.mxu0 %v2970_v29  ;;  %1280 = vmatpush.msk.msrb.mxu1 %vm2971_vm8, %v1643_v22  ;;  %v863_v63 = vsub.f32 %v2611_v20, %v862_v31  ;;  %vm2973_vm8 = vcmp.eq.s32.totalorder %v2095_v42, %v1832_v5  ;;  %v764_v39 = vsub.f32 %v2620_v44, %v763_v45 }
  0x8d   : >> { %v858_v55 = vand.u32 4294901760, %v857_v62  ;;  %853 = vmatpush.msrb.mxu3 %v852_v4  ;;  %1299 = vmatpush.msk.msrb.mxu2 %vm303_vm6, %v1643_v22 }
  0x8e   : >> { %873 = vmatpush.msra.mxu0 %v2227_v53  ;;  %1281 = vmatpush.msk.msrb.mxu1 %vm2972_vm4, %v1643_v22  ;;  %v864_v11 = vand.u32 4294901760, %v863_v63  ;;  %vm2975_vm4 = vcmp.eq.s32.totalorder %v2103_v50, %v1832_v5  ;;  %v765_v42 = vand.u32 4294901760, %v764_v39  ;;  %v2981_v50 = vand.u32 4294901760, %v2377_v0 }
  0x8f   : >> { %1300 = vmatpush.msk.msrb.mxu2 %vm2947_vm7, %v1643_v22  ;;  %859 = vmatpush.msrb.mxu3 %v858_v55  ;;  %vm2977_vm7 = vcmp.eq.s32.totalorder %v2145_v61, %v1832_v5  ;;  %v2982_v53 = vand.u32 4294901760, %v2413_v46  ;;  %v2983_v61 = vand.u32 4294901760, %v2454_v34 }
  0x90   : >> { %876 = vmatpush.msra.mxu0 %v2262_v10  ;;  %1282 = vmatpush.msk.msrb.mxu1 %vm2973_vm8, %v1643_v22  ;;  %vm2976_vm8 = vcmp.eq.s32.totalorder %v2182_v40, %v1832_v5  ;;  %v2984_v40 = vand.u32 4294901760, %v2468_v54 }
  0x91   : >> { %619 = vmatmul.f32.vlgmr.msra.gmra.mxu3 %v422_v19  ;;  %967 = vmatpush.msra.mxu2 %v2974_v52 }
  0x92   : >> { %879 = vmatpush.msra.mxu0 %v2276_v26  ;;  %1283 = vmatpush.msk.msrb.mxu1 %vm2975_vm4, %v1643_v22  ;;  %vm2978_vm4 = vmmov %vm2976_vm8  ;;  %v2979_v26 = vand.u32 4294901760, %v2332_v27 }
  0x93   : >> { %865 = vmatpush.msrb.mxu3 %v864_v11  ;;  %526 = vmatmul.f32.vlgmr.msra.gmra.mxu1 %v2471_v15 }
  0x94   : >> { %882 = vmatpush.msra.mxu0 %v2300_v58  ;;  %971 = vmatpush.msra.mxu2 %v778_v13  ;;  %v2980_v58 = vand.u32 4294901760, %v2347_v43 }
  0x95   : >> { %1317 = vmatpush.msk.msra.mxu3 %vm2976_vm8, %v1643_v22  ;;  %1284 = vmatpush.msk.msrb.mxu1 %vm2977_vm7, %v1643_v22 }
  0x96   : >> { %885 = vmatpush.msra.mxu0 %v2332_v27  ;;  %975 = vmatpush.msra.mxu2 %v784_v6 }
  0x97   : >> { %1301 = vmatpush.msk.msra.mxu1 %vm2978_vm4, %v1643_v22  ;;  %1318 = vmatpush.msk.msra.mxu3 %vm316_vm13, %v1643_v22 }
  0x98   : >> { %888 = vmatpush.msra.mxu0 %v2347_v43  ;;  %766 = vmatmul.f32.vlgmr.msrb.gmra.mxu2 %v765_v42 }
  0x99   : >> { %1302 = vmatpush.msk.msra.mxu1 %vm316_vm13, %v1643_v22  ;;  %979 = vmatpush.msra.mxu2 %v790_v35 }
  0x9a   : >> { %1319 = vmatpush.msk.msra.mxu3 %vm315_vm12, %v1643_v22  ;;  %891 = vmatpush.msra.mxu0 %v2359_v30 }
  0x9b   : >> { %688 = vmatmul.f32.vlgmr.msrb.gmra.mxu0 %v2471_v15  ;;  %867 = vmatmul.f32.vlgmr.msrb.gmra.mxu3 %v2570_v3 }
  0x9c   : >> { %1303 = vmatpush.msk.msra.mxu1 %vm315_vm12, %v1643_v22  ;;  %983 = vmatpush.msra.mxu2 %v2979_v26 }
  0x9d   : >> { %1320 = vmatpush.msk.msra.mxu3 %vm314_vm15, %v1643_v22  ;;  %894 = vmatpush.msra.mxu0 %v2377_v0 }
  0x9e   : >> { %725 = vmatmul.f32.vlgmr.msrb.gmra.mxu1 %v2471_v15  ;;  %987 = vmatpush.msra.mxu2 %v2980_v58 }
  0x9f   : >> { %1304 = vmatpush.msk.msra.mxu1 %vm314_vm15, %v1643_v22  ;;  %1321 = vmatpush.msk.msra.mxu3 %vm313_vm14, %v1643_v22 }
  0xa0   : >> { %897 = vmatpush.msra.mxu0 %v2413_v46  ;;  %991 = vmatpush.msra.mxu2 %v808_v49 }
  0xa1   : >> { %1305 = vmatpush.msk.msra.mxu1 %vm313_vm14, %v1643_v22  ;;  %1322 = vmatpush.msk.msra.mxu3 %vm312_vm10, %v1643_v22 }
  0xa2   : >> { %900 = vmatpush.msra.mxu0 %v2454_v34  ;;  %995 = vmatpush.msra.mxu2 %v2981_v50 }
  0xa3   : >> { %1306 = vmatpush.msk.msra.mxu1 %vm312_vm10, %v1643_v22  ;;  %1323 = vmatpush.msk.msra.mxu3 %vm311_vm11, %v1643_v22 }
  0xa4   : >> { %903 = vmatpush.msra.mxu0 %v2468_v54  ;;  %999 = vmatpush.msra.mxu2 %v2982_v53 }
  0xa5   : >> { %1307 = vmatpush.msk.msra.mxu1 %vm311_vm11, %v1643_v22  ;;  %1324 = vmatpush.msk.msra.mxu3 %vm310_vm9, %v1643_v22  ;;  %vm2988_vm11 = vcmp.eq.s32.totalorder %v2566_v21, %v1832_v5 }
  0xa6   : >> { %906 = vmatpush.msra.mxu0 %v2506_v32  ;;  %1003 = vmatpush.msra.mxu2 %v2983_v61  ;;  %vm2989_vm12 = vmmov %vm2988_vm11 }
  0xa7   : >> { %1308 = vmatpush.msk.msra.mxu1 %vm310_vm9, %v1643_v22  ;;  %1325 = vmatpush.msk.msra.mxu3 %vm309_vm0, %v1643_v22  ;;  %vm2986_vm9 = vcmp.eq.s32.totalorder %v2489_v14, %v1832_v5 }
  0xa8   : >> { %909 = vmatpush.msra.mxu0 %v2542_v18  ;;  %1007 = vmatpush.msra.mxu2 %v2984_v40  ;;  %vm2987_vm10 = vmmov %vm2986_vm9 }
  0xa9   : >> { %1309 = vmatpush.msk.msra.mxu1 %vm309_vm0, %v1643_v22  ;;  %1326 = vmatpush.msk.msra.mxu3 %vm308_vm1, %v1643_v22 }
  0xaa   : >> { %912 = vmatpush.msra.mxu0 %v2575_v16  ;;  %1011 = vmatpush.msra.mxu2 %v2985_v12 }
  0xab   : >> { %1310 = vmatpush.msk.msra.mxu1 %vm308_vm1, %v1643_v22  ;;  %1327 = vmatpush.msk.msra.mxu3 %vm307_vm2, %v1643_v22 }
  0xac   : >> { %915 = vmatpush.msra.mxu0 %v2597_v36  ;;  %1015 = vmatpush.msra.mxu2 %v844_v47 }
  0xad   : >> { %1311 = vmatpush.msk.msra.mxu1 %vm307_vm2, %v1643_v22  ;;  %1328 = vmatpush.msk.msra.mxu3 %vm306_vm3, %v1643_v22 }
  0xae   : >> { %918 = vmatpush.msra.mxu0 %v2611_v20  ;;  %1019 = vmatpush.msra.mxu2 %v850_v41 }
  0xaf   : >> { %921 = vmatmul.f32.vlgmr.msra.gmra.mxu0 %v2620_v44  ;;  %1312 = vmatpush.msk.msra.mxu1 %vm306_vm3, %v1643_v22 }
  0xb0   : >> { %1329 = vmatpush.msk.msra.mxu3 %vm2986_vm9, %v1643_v22  ;;  %1023 = vmatpush.msra.mxu2 %v856_v60 }
  0xb1   : >> { %1313 = vmatpush.msk.msra.mxu1 %vm2987_vm10, %v1643_v22 }
  0xb2   : >> { %1330 = vmatpush.msk.msra.mxu3 %vm304_vm5, %v1643_v22  ;;  %1027 = vmatpush.msra.mxu2 %v862_v31 }
  0xb3   : >> { %1314 = vmatpush.msk.msra.mxu1 %vm304_vm5, %v1643_v22  ;;  %1029 = vmatmul.f32.vlgmr.msra.gmra.mxu2 %v2570_v3 }
  0xb4   : >> { %1331 = vmatpush.msk.msra.mxu3 %vm303_vm6, %v1643_v22 }
  0xb5   : >> { %1315 = vmatpush.msk.msra.mxu1 %vm303_vm6, %v1643_v22 }
  0xb6   : >> { %1332 = vmatpush.msk.msra.mxu3 %vm2988_vm11, %v1643_v22 }
  0xb7   : >> { %1066 = vmatmul.f32.vlgmr.msra.gmra.mxu3 %v2570_v3  ;;  %1316 = vmatpush.msk.msra.mxu1 %vm2989_vm12, %v1643_v22 }
  0xb8   : >> { %960 = vmatmul.f32.vlgmr.msra.gmra.mxu1 %v763_v45 }
 0x106   : >> { %v426_v56 = vpop.f32.mrf.mxu0  ;;  %v581_v10 = vpop.f32.mrf.mxu2 }
 0x110   : >> { %v527_v37 = vpop.f32.mrf.mxu1 }
 0x111   : >> { %v528_v51 = vadd.f32 %v527_v37, %v426_v56 }
 0x113   : >> { %v582_v13 = vadd.f32 %v581_v10, %v528_v51 }
 0x114   : >> { %v620_v6 = vpop.f32.mrf.mxu3 }
 0x115   : >> { %v621_v28 = vadd.f32 %v620_v6, %v582_v13 }
 0x118   : >> { %v689_v33 = vpop.f32.mrf.mxu0 }
 0x119   : >> { %v690_v9 = vadd.f32 %v689_v33, %v621_v28 }
 0x11b   : >> { %v726_v35 = vpop.f32.mrf.mxu1  ;;  %v767_v43 = vpop.f32.mrf.mxu2 }
 0x11c   : >> { %v727_v27 = vadd.f32 %v726_v35, %v690_v9 }
 0x11e   : >> { %v768_v38 = vadd.f32 %v767_v43, %v727_v27  ;;  %v868_v30 = vpop.f32.mrf.mxu3 }
 0x120   : >> { %v869_v5 = vadd.f32 %v868_v30, %v768_v38 }
 0x12c   : >> { %v922_v48 = vpop.f32.mrf.mxu0 }
 0x12d   : >> { %v923_v22 = vadd.f32 %v922_v48, %v869_v5 }
 0x135   : >> { %v961_v46 = vpop.f32.mrf.mxu1 }
 0x136   : >> { %v962_v0 = vadd.f32 %v961_v46, %v923_v22  ;;  %v1030_v49 = vpop.f32.mrf.mxu2 }
 0x138   : >> { %v1031_v54 = vadd.f32 %v1030_v49, %v962_v0 }
 0x13a   : >> { %v1067_v34 = vpop.f32.mrf.mxu3 }
 0x13b   : >> { %v1068_v7 = vadd.f32 %v1067_v34, %v1031_v54  ;;  %217 = sbr.rel (!%p214_p4) target bundleno = 67 (0x43), region = 86 }
 0x13d   : >> { %v1070_v15 = vadd.f32 %v1068_v7, %v382_v57 }
 0x13f   : >> { %1071 = vst [vmem:[#allocation2] sm:$0xff] %v1070_v15 }
 0x140 PF: > { %s1335_s30 = sshll.u32 %s1808_s5, 3  ;;  %s1089_s11 = sshll.u32 %s1817_s7, 4  ;;  %s1090_s11 = int_to_ptr.vmem [resolvable:$true] %s1089_s11 }
 0x141   : > { %s1087_s10 = scalar_lea.hbm %s2916_s4, %s1335_s30  ;;  %s1075_s14 = scalar_lea.sflag [#allocation8], %s1797_s17 }
 0x142   : > { %s1091_s13 = sshll.u32 %s1087_s10, 4  ;;  %s1545_s5 = scalar_lea.hbm %s2916_s4, 48  ;;  %s1092_s13 = int_to_ptr.hbm [resolvable:$true] %s1091_s13 }
 0x143   : > { %s1539_s18 = sshra.s32 %s1092_s13, 4  ;;  %s1540_s18 = int_to_ptr.hbm [resolvable:$true] %s1539_s18 }
 0x144   : > { %s1541_s20 = scalar_lea.hbm %s1540_s18, 8  ;;  %p1546_p12 = scmp.lt.s32.totalorder %s1540_s18, %s2916_s4 }
 0x145   : > { %p1542_p8 = scmp.ne.s32.totalorder %s1540_s18, %s1541_s20  ;;  %p1547_p13 = scmp.lt.s32.totalorder %s1545_s5, %s1541_s20 }
 0x146   : > { %v1072_v8 = vld [vmem:[#allocation2] sm:$0xff] }
 0x147   : > { %1073 = vst [vmem:[%s1817_s7] sm:$0xff] %v1072_v8  ;;  %p1543_p10 = pnand %p1542_p8, %p1764_p3  ;;  %p1548_p0 = por %p1547_p13, %p1546_p12 }
 0x149   : > { %p1544_p11 = pneg %p1543_p10 }
 0x14b   : > { %p1549_p5 = pnand %p1548_p0, %p1544_p11 }
 0x14d   : > { %1552 = shalt.err (!%p1549_p5)
}
 0x14e   : > { %1345 = dma.vmem_to_hbm [thread:$0]  (%p1764_p3), %s1090_s11, 128, %s1092_s13, %s1075_s14  }
 0x14f PF: > { %p1362_p7 = scmp.ge.s32.totalorder %s1633_s28, 2  ;;  %s1103_s22 = sand.u32 1, %s1605_s23  }
 0x150   : > { %s1104_s7 = scalar_lea.sflag [#allocation8], %s1103_s22 }
 0x151   : > { %p1356_p9 = pnand %p1362_p7, %p1735_p6 }
 0x153   : > { %p1357_p2 = pneg %p1356_p9 }
 0x155   : > { %1600 = dma.done.wait (%p1357_p2), %s1104_s7, 128  }
 0x156   : > { %1602 = vsyncadd (%p1357_p2), %s1104_s7, 4294967168  ;;  %s34_s28 = sadd.s32 1, %s1633_s28   ;;  %s2991_s19 = sld [smem:[#allocation17_spill]] }
 0x157   : > { %p31_p1 = scmp.ge.s32.totalorder %s34_s28, 8   ;;  %s2992_s23 = smov %s1609_s0 }
 0x158   : > { %s2993_s0 = smov %s1613_s24  ;;  %s2994_s24 = smov %s1784_s2 }
 0x159   : > { %s2995_s1 = smov %s1625_s26  ;;  %s2996_s25 = smov %s1629_s27 }
 0x15a   : > { %s2998_s27 = smov %s3004_s16  ;;  %33 = sbr.rel (!%p31_p1) target bundleno = 16 (0x10), region = 97 }
 0x15c   : > { %s2997_s26 = smov %s2991_s19 }
 0x15f   :  { %1110 = vsyncpa [#allocation7], 1 }
 0x160   :  { %1112 = vsyncpa [#allocation7 + $0x1], 1 }
 0x161   :  { %1113 = vsyncpa [#allocation10], 1 }
 0x162   :  { %1115 = vsyncpa [#allocation10 + $0x1], 1 }
 0x163   :  { %1116 = vsyncpa [#allocation8], 1 }
 0x164   :  { %1118 = vsyncpa [#allocation8 + $0x1], 1 }

</bundles_post_ra>
